<compile_context>
chip_gen: v5e
topology: v5e:2x2
jax: 0.10.0
libtpu: 0.0.40
codegen_flags: <defaults>
</compile_context>

<pallas_src>
import functools
import math

import jax
import jax.numpy as jnp
from jax import lax
from jax.experimental import pallas as pl
from jax.experimental.pallas import tpu as pltpu

TAU = 2.0 * math.pi


class LengthMismatchError(Exception):
    pass


# --------------------------------------------------------------------------
# Kernels
# --------------------------------------------------------------------------
def _osc_cumsum_kernel(*refs, scale, has_pm, pm_scalar, n_sub, tt_inner,
                       tt_outer, t_valid):
    """Blocked right-shifted (exclusive) cumsum + sin.

    grid = (N tiles, T tiles); the T axis carries an f32 running sum.
    Per outer step, loop over `n_sub` MXU-sized sub-columns:
        local = f_sub @ TRI          (strict upper triangular, resident)
        phase = scale * (carry + local) + pm_sub ; out_sub = sin(phase)
        carry += exact row-sum of f_sub
    """
    if has_pm:
        tri_ref, freq_ref, pm_ref, out_ref, carry_ref = refs
    else:
        tri_ref, freq_ref, out_ref, carry_ref = refs

    t = pl.program_id(1)

    @pl.when(t == 0)
    def _():
        carry_ref[...] = jnp.zeros_like(carry_ref)

    tri = tri_ref[...]                                  # [tt_inner, tt_inner]

    # Only emit tail-column masking code when T isn't tile aligned (static).
    needs_mask = (t_valid % tt_outer) != 0
    if needs_mask:
        col = lax.broadcasted_iota(jnp.int32, (1, tt_inner), 1)

    carry = carry_ref[...]                              # [nt, 1] f32 (exact)
    if has_pm and pm_scalar:
        pm_all = pm_ref[...].astype(jnp.float32)        # [nt, 1]

    for s in range(n_sub):                              # short static unroll
        lo = s * tt_inner
        f = freq_ref[:, lo:lo + tt_inner].astype(jnp.float32)
        if needs_mask:
            # zero columns past the valid signal length (garbage in the
            # partial edge block must not leak NaNs through the matmul)
            limit = t_valid - t * tt_outer - lo
            f = jnp.where(col < limit, f, 0.0)

        # Within-sub-block exclusive prefix sum on the MXU (f32 accumulate).
        local = jnp.dot(f, tri, preferred_element_type=jnp.float32)

        phase = scale * (carry + local)
        if has_pm:
            if pm_scalar:
                phase = phase + pm_all
            else:
                phase = phase + pm_ref[:, lo:lo + tt_inner].astype(jnp.float32)
        out_ref[:, lo:lo + tt_inner] = jnp.sin(phase).astype(out_ref.dtype)

        # Exact f32 carry update on the otherwise-idle XLU slot.
        carry = carry + jnp.sum(f, axis=-1, keepdims=True)

    carry_ref[...] = carry


def _osc_scalar_kernel(*refs, scale, has_pm, block_t):
    """Analytic path for scalar frequency: phase = scale * f0 * sample_idx."""
    # TODO(synk): no range reduction of scale*f0*idx before sin; matches the
    # reference's own f32 precision at practical lengths.
    if has_pm:
        f0_ref, pm_ref, out_ref = refs
    else:
        f0_ref, out_ref = refs

    t = pl.program_id(1)
    col = lax.broadcasted_iota(jnp.int32, (1, block_t), 1)
    idx = (col + t * block_t).astype(jnp.float32)            # [1, bt]
    phase = scale * f0_ref[...].astype(jnp.float32) * idx    # [bn, bt]
    if has_pm:
        phase = phase + pm_ref[...].astype(jnp.float32)
    out_ref[...] = jnp.sin(phase).astype(out_ref.dtype)


# --------------------------------------------------------------------------
# Tiling helpers
# --------------------------------------------------------------------------
def _round_up(x, m):
    return ((x + m - 1) // m) * m


def _mxu_lane_tile():
    # 256 matches the v6e/v7x MXU geometry; 128 for v5e & older/unknown.
    try:
        kind = jax.devices()[0].device_kind.lower()
    except Exception:
        kind = ""
    return 256 if ("v6" in kind or "v7" in kind) else 128


_TARGET_BLOCK_ELEMS = 1 << 18     # ~1 MiB f32 per stream per grid step


def _row_tile(N):
    # Row block: full dim when small (always layout-legal), else 512.
    return N if N <= 512 else 512


# --------------------------------------------------------------------------
# pallas_call wrappers
# --------------------------------------------------------------------------
def _call_cumsum(f2, pm2, scale):
    """f2: [N, T] frequency; pm2: None, [N, T] or [N, 1]."""
    N, T = f2.shape
    has_pm = pm2 is not None
    pm_scalar = has_pm and pm2.shape[-1] == 1

    tt_inner = min(_mxu_lane_tile(), _round_up(T, 128))
    nt = _row_tile(N)
    # Widen the time block (up to 8 MXU sub-columns) when rows are few, so
    # each grid step moves ~1 MiB per stream and overhead is amortized.
    n_sub = max(1, min(8,
                       _TARGET_BLOCK_ELEMS // max(1, nt * tt_inner),
                       pl.cdiv(T, tt_inner)))
    tt_outer = n_sub * tt_inner

    grid = (pl.cdiv(N, nt), pl.cdiv(T, tt_outer))

    # Strict upper-triangular ones tile, DMA'd once and resident (constant
    # index_map), reused by every sub-matmul of every grid step.
    tri = jnp.triu(jnp.ones((tt_inner, tt_inner), jnp.float32), k=1)

    inputs = [tri, f2]
    in_specs = [
        pl.BlockSpec((tt_inner, tt_inner), lambda n, t: (0, 0)),
        pl.BlockSpec((nt, tt_outer), lambda n, t: (n, t)),
    ]
    if has_pm:
        inputs.append(pm2)
        if pm_scalar:
            in_specs.append(pl.BlockSpec((nt, 1), lambda n, t: (n, 0)))
        else:
            in_specs.append(pl.BlockSpec((nt, tt_outer), lambda n, t: (n, t)))

    kern = functools.partial(
        _osc_cumsum_kernel, scale=scale, has_pm=has_pm, pm_scalar=pm_scalar,
        n_sub=n_sub, tt_inner=tt_inner, tt_outer=tt_outer, t_valid=T)

    return pl.pallas_call(
        kern,
        out_shape=jax.ShapeDtypeStruct((N, T), jnp.float32),
        grid_spec=pltpu.PrefetchScalarGridSpec(
            num_scalar_prefetch=0,
            grid=grid,
            in_specs=in_specs,
            out_specs=pl.BlockSpec((nt, tt_outer), lambda n, t: (n, t)),
            scratch_shapes=[pltpu.VMEM((nt, 1), jnp.float32)],
        ),
        compiler_params=pltpu.CompilerParams(
            dimension_semantics=("parallel", "arbitrary")),
    )(*inputs)


def _call_scalar(f0_2, pm2, T, scale):
    """f0_2: [N, 1] scalar frequency; pm2: None, [N, T] or [N, 1]."""
    N = f0_2.shape[0]
    has_pm = pm2 is not None
    pm_scalar = has_pm and pm2.shape[-1] == 1

    nt = _row_tile(N)
    t_full = _round_up(T, 128)
    tt = min(t_full, 4096,
             _round_up(max(1, _TARGET_BLOCK_ELEMS // nt), 128))
    tt = max(tt, 128)
    grid = (pl.cdiv(N, nt), pl.cdiv(T, tt))

    inputs = [f0_2]
    in_specs = [pl.BlockSpec((nt, 1), lambda n, t: (n, 0))]
    if has_pm:
        inputs.append(pm2)
        if pm_scalar:
            in_specs.append(pl.BlockSpec((nt, 1), lambda n, t: (n, 0)))
        else:
            in_specs.append(pl.BlockSpec((nt, tt), lambda n, t: (n, t)))

    kern = functools.partial(_osc_scalar_kernel, scale=scale,
                             has_pm=has_pm, block_t=tt)
    return pl.pallas_call(
        kern,
        out_shape=jax.ShapeDtypeStruct((N, T), jnp.float32),
        grid_spec=pltpu.PrefetchScalarGridSpec(
            num_scalar_prefetch=0,
            grid=grid,
            in_specs=in_specs,
            out_specs=pl.BlockSpec((nt, tt), lambda n, t: (n, t)),
        ),
        compiler_params=pltpu.CompilerParams(
            dimension_semantics=("parallel", "parallel")),
    )(*inputs)


# --------------------------------------------------------------------------
# Forward wrapper (mirrors Oscillator.forward)
# --------------------------------------------------------------------------
def oscillator_forward(frequency, phase_mod=None, length=None, sample_rate=None):
    frequency = jnp.asarray(frequency, jnp.float32)
    has_pm = phase_mod is not None
    if has_pm:
        phase_mod = jnp.asarray(phase_mod, jnp.float32)

    # _replace_empty_sample_rate (`or` semantics, same as the reference)
    sample_rate = sample_rate or TAU
    scale = TAU / float(sample_rate)

    pm_last = phase_mod.shape[-1] if has_pm else frequency.shape[-1]

    # _check_input_shape
    if length is None:
        if frequency.shape[-1] == 1 and pm_last == 1:
            raise LengthMismatchError(
                "Sample length must be provided for scalar frequency and "
                "phase_mod parameters")
    elif frequency.shape[-1] > 1 or pm_last > 1:
        raise LengthMismatchError(
            "Can't use length parameter when a time dimension is provided "
            "for frequency or phase.")

    freq_scalar = frequency.shape[-1] == 1
    if freq_scalar:
        T = int(length) if length is not None else int(pm_last)
    else:
        T = frequency.shape[-1]

    # output shape = broadcast(freq leading dims + (T,), phase_mod shape)
    freq_full_shape = frequency.shape[:-1] + (T,)
    if has_pm:
        out_shape = jnp.broadcast_shapes(freq_full_shape, phase_mod.shape)
    else:
        out_shape = freq_full_shape
    lead = out_shape[:-1]
    N = int(math.prod(lead)) if lead else 1

    # phase_mod flattened as [N, T] or [N, 1] (never materialize zeros).
    pm2 = None
    if has_pm:
        if phase_mod.shape[-1] == 1:
            pm2 = jnp.broadcast_to(phase_mod, lead + (1,)).reshape(N, 1)
        else:
            pm2 = jnp.broadcast_to(phase_mod, lead + (T,)).reshape(N, T)

    if freq_scalar:
        f0_2 = jnp.broadcast_to(frequency, lead + (1,)).reshape(N, 1)
        out2 = _call_scalar(f0_2, pm2, T, scale)
    else:
        f2 = jnp.broadcast_to(frequency, lead + (T,)).reshape(N, T)
        out2 = _call_cumsum(f2, pm2, scale)

    return out2.reshape(out_shape)


# --------------------------------------------------------------------------
# Pure-JAX reference (mirrors the PyTorch math) for correctness checks.
# --------------------------------------------------------------------------
def _reference_forward(frequency, phase_mod=None, length=None, sample_rate=None):
    f = jnp.asarray(frequency, jnp.float32)
    sr = sample_rate or TAU
    pm = jnp.zeros_like(f) if phase_mod is None else jnp.asarray(phase_mod,
                                                                 jnp.float32)
    if length is None and pm.shape[-1] > 1:
        length = pm.shape[-1]
    if f.shape[-1] == 1:
        f = jnp.repeat(f, length, axis=-1)
    T = f.shape[-1]
    f_shift = jnp.pad(f, [(0, 0)] * (f.ndim - 1) + [(1, 0)])[..., :T]
    phase = TAU * jnp.cumsum(f_shift, axis=-1) / sr + pm
    return jnp.sin(phase)


if __name__ == "__main__":
    key = jax.random.PRNGKey(0)
    k1, k2, k3, k4 = jax.random.split(key, 4)

    sample_rate = 16000.0

    # 1) time-varying frequency + phase_mod (cumsum path, tile-aligned T)
    N, T = 2, 128
    frequency = 220.0 + 50.0 * jax.random.uniform(k1, (N, T), jnp.float32)
    phase_mod = 0.1 * jax.random.normal(k2, (N, T), jnp.float32)
    out = jax.block_until_ready(
        oscillator_forward(frequency, phase_mod=phase_mod,
                           sample_rate=sample_rate))
    ref = _reference_forward(frequency, phase_mod, sample_rate=sample_rate)
    assert out.shape == (N, T)
    assert jnp.allclose(out, ref, atol=1e-4, rtol=1e-4), "cumsum path mismatch"

    # 2) time-varying frequency, no phase_mod (no zeros streamed)
    out_np = jax.block_until_ready(
        oscillator_forward(frequency, sample_rate=sample_rate))
    ref_np = _reference_forward(frequency, sample_rate=sample_rate)
    assert jnp.allclose(out_np, ref_np, atol=1e-4, rtol=1e-4), \
        "no-phase_mod path mismatch"

    # 3) scalar frequency + length (analytic path, angular frequency)
    f_scalar = jnp.full((N, 1), 0.05, jnp.float32)     # rad / sample
    out2 = jax.block_until_ready(oscillator_forward(f_scalar, length=T))
    ref2 = _reference_forward(f_scalar, length=T)
    assert out2.shape == (N, T)
    assert jnp.allclose(out2, ref2, atol=1e-4, rtol=1e-4), \
        "scalar-frequency path mismatch"

    # 4) unaligned N / T: exercises the no-pad cdiv grid, in-kernel tail
    #    masking, and the exact carry across multiple time blocks.
    #    (Low frequencies keep the accumulated phase small so f32
    #    summation-order differences vs. the reference stay << tolerance.)
    N4, T4 = 3, 2500
    freq4 = 1.0 + 2.0 * jax.random.uniform(k3, (N4, T4), jnp.float32)
    pm4 = 0.1 * jax.random.normal(k4, (N4, T4), jnp.float32)
    out4 = jax.block_until_ready(
        oscillator_forward(freq4, phase_mod=pm4, sample_rate=sample_rate))
    ref4 = _reference_forward(freq4, pm4, sample_rate=sample_rate)
    assert out4.shape == (N4, T4)
    assert jnp.allclose(out4, ref4, atol=1e-4, rtol=1e-4), \
        "unaligned-shape path mismatch"

    print("KERNEL_OK")
</pallas_src>

<mosaic_0001>
module attributes {stable_mosaic.version = 11 : i64} {
  func.func @_osc_cumsum_kernel(%arg0: i32, %arg1: i32, %arg2: memref<128x128xf32, #tpu.memory_space<vmem>>, %arg3: memref<2x128xf32, #tpu.memory_space<vmem>>, %arg4: memref<2x128xf32, #tpu.memory_space<vmem>>, %arg5: memref<2x128xf32, #tpu.memory_space<vmem>>, %arg6: memref<2x1xf32, #tpu.memory_space<vmem>>) attributes {dimension_semantics = [#tpu.dimension_semantics<parallel>, #tpu.dimension_semantics<arbitrary>], iteration_bounds = array<i64: 1, 1>, scalar_prefetch = 0 : i64, scratch_operands = 1 : i64, tpu.core_type = #tpu.core_type<tc>, window_params = [{pipeline_mode = #tpu.pipeline_mode<synchronous>, transform_indices = @transform_0, window_bounds = array<i64: 128, 128>}, {transform_indices = @transform_1, window_bounds = array<i64: 2, 128>}, {transform_indices = @transform_2, window_bounds = array<i64: 2, 128>}, {transform_indices = @transform_3, window_bounds = array<i64: 2, 128>}]} {
    %c0_i32 = arith.constant 0 : i32
    %0 = arith.cmpi eq, %arg1, %c0_i32 : i32
    %1 = arith.extui %0 : i1 to i32
    %c0_i32_0 = arith.constant 0 : i32
    %2 = arith.cmpi ne, %1, %c0_i32_0 : i32
    scf.if %2 {
      %cst_14 = arith.constant 0.000000e+00 : f32
      %19 = vector.broadcast %cst_14 : f32 to vector<2x1xf32>
      %c0_15 = arith.constant 0 : index
      %c0_16 = arith.constant 0 : index
      %20 = vector.load %arg6[%c0_15, %c0_16] : memref<2x1xf32, #tpu.memory_space<vmem>>, vector<2x1xf32>
      tpu.vector_store %arg6[%c0_15, %c0_16], %19 {strides = array<i32>} : memref<2x1xf32, #tpu.memory_space<vmem>>, vector<2x1xf32>,
    } else {
    }
    %c0 = arith.constant 0 : index
    %c0_1 = arith.constant 0 : index
    %3 = vector.load %arg2[%c0, %c0_1] : memref<128x128xf32, #tpu.memory_space<vmem>>, vector<128x128xf32>
    %c0_2 = arith.constant 0 : index
    %c0_3 = arith.constant 0 : index
    %4 = vector.load %arg6[%c0_2, %c0_3] : memref<2x1xf32, #tpu.memory_space<vmem>>, vector<2x1xf32>
    %c0_4 = arith.constant 0 : index
    %c0_5 = arith.constant 0 : index
    %5 = vector.load %arg3[%c0_4, %c0_5] : memref<2x128xf32, #tpu.memory_space<vmem>>, vector<2x128xf32>
    %cst = arith.constant dense<0.000000e+00> : vector<2x128xf32>
    %6 = tpu.matmul %5, %3, %cst {dimension_numbers = #tpu.dot_dimension_numbers<[1], [0], [0], [1], [0, 0, 1, 1], [], []>} : vector<2x128xf32>, vector<128x128xf32>, vector<2x128xf32> -> vector<2x128xf32>
    %7 = vector.broadcast %4 : vector<2x1xf32> to vector<2x128xf32>
    %8 = arith.addf %7, %6 : vector<2x128xf32>
    %cst_6 = arith.constant 3.9269909E-4 : f32
    %9 = vector.broadcast %cst_6 : f32 to vector<2x128xf32>
    %10 = arith.mulf %9, %8 : vector<2x128xf32>
    %c0_7 = arith.constant 0 : index
    %c0_8 = arith.constant 0 : index
    %11 = vector.load %arg4[%c0_7, %c0_8] : memref<2x128xf32, #tpu.memory_space<vmem>>, vector<2x128xf32>
    %12 = arith.addf %10, %11 : vector<2x128xf32>
    %13 = math.sin %12 : vector<2x128xf32>
    %c0_9 = arith.constant 0 : index
    %c0_10 = arith.constant 0 : index
    %14 = vector.load %arg5[%c0_9, %c0_10] : memref<2x128xf32, #tpu.memory_space<vmem>>, vector<2x128xf32>
    tpu.vector_store %arg5[%c0_9, %c0_10], %13 {strides = array<i32>} : memref<2x128xf32, #tpu.memory_space<vmem>>, vector<2x128xf32>,
    %cst_11 = arith.constant dense<0.000000e+00> : vector<2xf32>
    %15 = vector.multi_reduction <add>, %5, %cst_11 [1] : vector<2x128xf32> to vector<2xf32>
    %16 = vector.shape_cast %15 : vector<2xf32> to vector<2x1xf32>
    %17 = arith.addf %4, %16 : vector<2x1xf32>
    %c0_12 = arith.constant 0 : index
    %c0_13 = arith.constant 0 : index
    %18 = vector.load %arg6[%c0_12, %c0_13] : memref<2x1xf32, #tpu.memory_space<vmem>>, vector<2x1xf32>
    tpu.vector_store %arg6[%c0_12, %c0_13], %17 {strides = array<i32>} : memref<2x1xf32, #tpu.memory_space<vmem>>, vector<2x1xf32>,
    return
  }
  func.func @transform_0(%arg0: i32, %arg1: i32) -> (i32, i32) {
    %c0_i32 = arith.constant 0 : i32
    %c0_i32_0 = arith.constant 0 : i32
    %c0_i32_1 = arith.constant 0 : i32
    return %c0_i32, %c0_i32_0 : i32, i32
  }
  func.func @transform_1(%arg0: i32, %arg1: i32) -> (i32, i32) {
    %c0_i32 = arith.constant 0 : i32
    return %arg0, %arg1 : i32, i32
  }
  func.func @transform_2(%arg0: i32, %arg1: i32) -> (i32, i32) {
    %c0_i32 = arith.constant 0 : i32
    return %arg0, %arg1 : i32, i32
  }
  func.func @transform_3(%arg0: i32, %arg1: i32) -> (i32, i32) {
    %c0_i32 = arith.constant 0 : i32
    return %arg0, %arg1 : i32, i32
  }
}

</mosaic_0001>

<bundles_post_ra>
// kernel: tpu_custom_call.1
= control target key start
LH: loop header
LB: loop body
LE: loop exit
PB: predicated region body
PF: predicated region fallthrough
CT: control target
= control target key end

     0   :  { %8 = vsyncpa [#allocation4], 0  ;;  %s511_s0 = inlined_call_operand.hbm [shape: f32[128,128], index: 0, kind: input, shape index: {}]   ;;  %s512_s1 = inlined_call_operand.hbm [shape: f32[2,128], index: 1, kind: input, shape index: {}]   ;;  %s513_s2 = inlined_call_operand.hbm [shape: f32[2,128], index: 2, kind: input, shape index: {}]   ;;  %s514_s3 = inlined_call_operand.hbm [shape: f32[2,128], index: 3, kind: output, shape index: {}]  }
   0x1   :  { %9 = vsyncpa [#allocation7], 0  ;;  %s29_s14 = sshll.u32 %s512_s1, 4  ;;  %s30_s14 = int_to_ptr.hbm [resolvable:$true] %s29_s14 }
   0x2   :  { %10 = vsyncpa [#allocation5], 0  ;;  %s412_s15 = smov [#allocation6]   ;;  %s15_s19 = sshll.u32 %s511_s0, 4  ;;  %s16_s19 = int_to_ptr.hbm [resolvable:$true] %s15_s19 }
   0x3   :  { %s31_s16 = sshll.u32 %s412_s15, 4  ;;  %s413_s20 = smov [#allocation3]   ;;  %s32_s16 = int_to_ptr.vmem [resolvable:$true] %s31_s16 }
   0x4   :  { %34 = dma.hbm_to_vmem [thread:$0]  %s30_s14, 32, %s32_s16, [#allocation7]  }
   0x5   :  { %s17_s21 = sshll.u32 %s413_s20, 4  ;;  %s414_s22 = smov 128   ;;  %s18_s21 = int_to_ptr.vmem [resolvable:$true] %s17_s21 }
   0x6   :  { %s415_s23 = smov 8   ;;  %s40_s1 = sshll.u32 %s513_s2, 4  ;;  %s41_s1 = int_to_ptr.hbm [resolvable:$true] %s40_s1 }
   0x7   :  { %23 = dma.hbm_to_vmem [thread:$0]  %s16_s19, 2048, %s18_s21, [#allocation4], %s414_s22, %s414_s22, %s415_s23  }
   0x8   :  { %s416_s26 = smov [#allocation8]  }
   0x9   :  { %s42_s27 = sshll.u32 %s416_s26, 4  ;;  %s43_s27 = int_to_ptr.vmem [resolvable:$true] %s42_s27 }
   0xa   :  { %45 = dma.hbm_to_vmem [thread:$0]  %s41_s1, 32, %s43_s27, [#allocation7]  }
   0xb   :  { %406 = dma.done.wait [#allocation4], 2048  }
   0xc   :  { %407 = vsyncadd [#allocation4], 4294965248 }
   0xd   :  { %408 = dma.done.wait [#allocation7], 64  }
   0xe   :  { %409 = vsyncadd [#allocation7], 4294967232  ;;  %v79_v0 = vld [vmem:[#allocation3 + $0x78] sm:$0xff]  ;;  %v78_v1 = vld [vmem:[#allocation3 + $0x70] sm:$0xff]  ;;  %vm62_vm0 = vcmask 1024   ;;  %v417_v2 = vmov 0  }
   0xf   :  { %82 = vmatpush.msra.mxu0 %v79_v0  ;;  %309 = vset.pattern.permute.xlu0 %v417_v2  ;;  %v418_v3 = vmov 0.0   ;;  %v77_v4 = vld [vmem:[#allocation3 + $0x68] sm:$0xff]  ;;  %v76_v5 = vld [vmem:[#allocation3 + $0x60] sm:$0xff]  ;;  %v75_v6 = vld [vmem:[#allocation3 + $0x58] sm:$0xff]  ;;  %vm267_vm1 = vcmask 1041408   ;;  %s425_s0 = smov [#allocation9]  }
  0x10   :  { %63 = vst.msk [vmem:[#allocation2] sm:$0x3] %vm62_vm0, %v418_v3  ;;  %v74_v7 = vld [vmem:[#allocation3 + $0x50] sm:$0xff]  ;;  %v73_v9 = vld [vmem:[#allocation3 + $0x48] sm:$0xff]  ;;  %v72_v10 = vld [vmem:[#allocation3 + $0x40] sm:$0xff]  ;;  %s279_s2 = sshll.u32 %s425_s0, 4  ;;  %s280_s2 = int_to_ptr.vmem [resolvable:$true] %s279_s2 }
  0x11   :  { %83 = vmatpush.msra.mxu0 %v78_v1  ;;  %v71_v11 = vld [vmem:[#allocation3 + $0x38] sm:$0xff]  ;;  %v70_v12 = vld [vmem:[#allocation3 + $0x30] sm:$0xff]  ;;  %v69_v13 = vld [vmem:[#allocation3 + $0x28] sm:$0xff]  ;;  %v419_v40 = vmov 683565275   ;;  %s281_s30 = sshll.u32 %s514_s3, 4  ;;  %s282_s30 = int_to_ptr.hbm [resolvable:$true] %s281_s30 }
  0x12   :  { %v68_v14 = vld [vmem:[#allocation3 + $0x20] sm:$0xff]  ;;  %v67_v15 = vld [vmem:[#allocation3 + $0x18] sm:$0xff]  ;;  %v66_v16 = vld [vmem:[#allocation3 + $0x10] sm:$0xff]  ;;  %v420_v42 = vmov 2475754826  }
  0x13   :  { %84 = vmatpush.msra.mxu0 %v77_v4  ;;  %v65_v17 = vld [vmem:[#allocation3 + $0x8] sm:$0xff]  ;;  %v64_v18 = vld [vmem:[#allocation3] sm:$0xff]  ;;  %v421_v44 = vmov 2131351028   ;;  %v422_v46 = vmov 2102212464  }
  0x14   :  { %v81_v19 = vld [vmem:[#allocation6] sm:$0x3]  ;;  %v109_v24 = vld [vmem:[#allocation8] sm:$0x3]  ;;  %v423_v51 = vmov 920167782  }
  0x15   :  { %85 = vmatpush.msra.mxu0 %v76_v5  ;;  %v268_v20 = vsel %vm267_vm1, %v81_v19, 0.0  ;;  %v424_v54 = vmov 1326507024  }
  0x17   :  { %v80_v8 = vld [vmem:[#allocation2] sm:$0x3]  ;;  %86 = vmatpush.msra.mxu0 %v75_v6 }
  0x18   :  { %104 = vperm.xlu0 %309, %v80_v8  }
  0x19   :  { %87 = vmatpush.msra.mxu0 %v74_v7 }
  0x1b   :  { %88 = vmatpush.msra.mxu0 %v73_v9 }
  0x1d   :  { %89 = vmatpush.msra.mxu0 %v72_v10 }
  0x1f   :  { %90 = vmatpush.msra.mxu0 %v71_v11 }
  0x21   :  { %91 = vmatpush.msra.mxu0 %v70_v12 }
  0x23   :  { %92 = vmatpush.msra.mxu0 %v69_v13 }
  0x25   :  { %93 = vmatpush.msra.mxu0 %v68_v14 }
  0x27   :  { %94 = vmatpush.msra.mxu0 %v67_v15 }
  0x29   :  { %95 = vmatpush.msra.mxu0 %v66_v16 }
  0x2b   :  { %96 = vmatpush.msra.mxu0 %v65_v17 }
  0x2d   :  { %97 = vmatpush.msra.mxu0 %v64_v18 }
  0x2e   :  { %98 = vmatmul.f32.vlgmr.msra.gmra.mxu0 %v81_v19 }
  0x42   :  { %269 = vadd.xlane.f32.xlu0 %v268_v20 }
  0x8a   :  { %v105_v21 = vpop.permute.xlu0 %104 }
  0xab   :  { %v99_v22 = vpop.f32.mrf.mxu0 }
  0xac   :  { %v107_v23 = vadd.f32 %v105_v21, %v99_v22 }
  0xae   :  { %v108_v25 = vmul.f32 0.0003926991, %v107_v23 }
  0xb0   :  { %v457_v26 = vadd.f32 %v109_v24, %v108_v25 }
  0xb2   :  { %v114_v27 = vand.u32 2139095040, %v457_v26  ;;  %v111_v30 = vand.u32 2147483647, %v457_v26  ;;  %vm113_vm14 = vcmp.lt.s32.totalorder %v457_v26, 0 }
  0xb4   :  { %v115_v28 = vshrl.u32 %v114_v27, 23  ;;  %v118_v34 = vand.u32 8388607, %v111_v30  ;;  %vm112_vm15 = vcmp.le.f32.partialorder %v111_v30, 0.7853982 }
  0xb5   :  { %v270_v29 = vpop.xlane.xlu0 %269 }
  0xb6   :  { %v271_v31 = vadd.f32 %v270_v29, %v80_v8  ;;  %v292_v32 = vadd.s32 4294967169, %v115_v28  ;;  %v119_v37 = vor.u32 8388608, %v118_v34 }
  0xb8   :  { %273 = vst.msk [vmem:[#allocation2] sm:$0x3] %vm62_vm0, %v271_v31  ;;  %v121_v33 = vadd.s32 1, %v292_v32  ;;  %v466_v56 = vshll.u32 %v119_v37, 8 }
  0xba   :  { %vm122_vm2 = vcmp.gt.s32.totalorder %v121_v33, 0  ;;  %v160_v5 = vand.u32 65535, %v466_v56  ;;  %v161_v7 = vshrl.u32 %v466_v56, 16 }
  0xbb   :  { %v123_v35 = vsel %vm122_vm2, %v121_v33, 0 }
  0xbc   :  { %v125_v36 = vand.u32 31, %v123_v35  ;;  %v464_v38 = vshrl.u32 %v123_v35, 5 }
  0xbe   :  { %v126_v39 = vsub.s32 32, %v125_v36  ;;  %v128_v41 = vshll.u32 %v419_v40, %v125_v36  ;;  %v131_v43 = vshll.u32 %v420_v42, %v125_v36  ;;  %v134_v45 = vshll.u32 %v421_v44, %v125_v36 }
  0xbf   :  { %v137_v47 = vshll.u32 %v422_v46, %v125_v36  ;;  %v140_v53 = vshll.u32 %v423_v51, %v125_v36  ;;  %vm143_vm3 = vcmp.lt.s32.totalorder %v464_v38, 1  ;;  %vm146_vm4 = vcmp.lt.s32.totalorder %v464_v38, 4 }
  0xc0   :  { %v129_v48 = vshrl.u32 %v420_v42, %v126_v39  ;;  %v132_v49 = vshrl.u32 %v421_v44, %v126_v39  ;;  %v135_v50 = vshrl.u32 %v422_v46, %v126_v39  ;;  %v138_v52 = vshrl.u32 %v423_v51, %v126_v39 }
  0xc1   :  { %v141_v55 = vshrl.u32 %v424_v54, %v126_v39  ;;  %vm145_vm5 = vcmp.lt.s32.totalorder %v464_v38, 3  ;;  %vm144_vm6 = vcmp.lt.s32.totalorder %v464_v38, 2  ;;  %v127_v33 = vshrl.u32 %v419_v40, %v126_v39 }
  0xc2   :  { %v130_v57 = vor.u32 %v129_v48, %v128_v41  ;;  %v133_v58 = vor.u32 %v132_v49, %v131_v43  ;;  %v136_v59 = vor.u32 %v135_v50, %v134_v45  ;;  %v139_v60 = vor.u32 %v138_v52, %v137_v47 }
  0xc3   :  { %v142_v61 = vor.u32 %v141_v55, %v140_v53 }
  0xc4   :  { %v151_v62 = vsel %vm143_vm3, %v130_v57, %v133_v58  ;;  %v152_v63 = vsel %vm146_vm4, %v139_v60, 920167782  ;;  %v155_v0 = vsel %vm143_vm3, %v133_v58, %v136_v59  ;;  %v148_v29 = vsel %vm146_vm4, %v136_v59, 2102212464 }
  0xc5   :  { %v153_v1 = vsel %vm145_vm5, %v136_v59, %v152_v63  ;;  %v156_v3 = vsel %vm146_vm4, %v142_v61, 1326507024  ;;  %v147_v42 = vsel %vm143_vm3, %v127_v33, %v130_v57  ;;  %v149_v43 = vsel %vm145_vm5, %v133_v58, %v148_v29 }
  0xc6   :  { %v157_v4 = vsel %vm145_vm5, %v139_v60, %v156_v3  ;;  %v154_v6 = vsel %vm144_vm6, %v151_v62, %v153_v1  ;;  %v150_v40 = vsel %vm144_vm6, %v147_v42, %v149_v43  ;;  %vm254_vm3 = vweird.f32 %v457_v26 }
  0xc7   :  { %v158_v8 = vsel %vm144_vm6, %v155_v0, %v157_v4  ;;  %v184_v9 = vand.u32 65535, %v154_v6  ;;  %v185_v10 = vshrl.u32 %v154_v6, 16  ;;  %v204_v52 = vmul.u32 %v466_v56, %v150_v40 }
  0xc8   :  { %v162_v11 = vand.u32 65535, %v158_v8  ;;  %v163_v12 = vshrl.u32 %v158_v8, 16 }
  0xc9   :  { %v187_v13 = vmul.u32 %v185_v10, %v160_v5  ;;  %v188_v14 = vmul.u32 %v184_v9, %v161_v7  ;;  %v186_v17 = vmul.u32 %v184_v9, %v160_v5  ;;  %v189_v21 = vmul.u32 %v185_v10, %v161_v7 }
  0xca   :  { %v165_v15 = vmul.u32 %v163_v12, %v160_v5  ;;  %v166_v16 = vmul.u32 %v162_v11, %v161_v7  ;;  %v164_v19 = vmul.u32 %v162_v11, %v160_v5  ;;  %v167_v22 = vmul.u32 %v163_v12, %v161_v7 }
  0xcb   :  { %v190_v18 = vshll.u32 %v187_v13, 16  ;;  %v192_v23 = vshll.u32 %v188_v14, 16  ;;  %v191_v37 = vshrl.u32 %v187_v13, 16  ;;  %v193_v46 = vshrl.u32 %v188_v14, 16 }
  0xcc   :  { %v168_v20 = vshll.u32 %v165_v15, 16  ;;  %v170_v25 = vshll.u32 %v166_v16, 16  ;;  %v169_v44 = vshrl.u32 %v165_v15, 16  ;;  %v171_v48 = vshrl.u32 %v166_v16, 16 }
  0xcd   :  { %vm194_vm7 = vc.u32 %v186_v17, %v190_v18  ;;  %v196_v24 = vadd.s32 %v190_v18, %v186_v17 }
  0xce   :  { %vm172_vm8 = vc.u32 %v164_v19, %v168_v20  ;;  %v174_v27 = vadd.s32 %v168_v20, %v164_v19  ;;  %v195_v28 = vsel %vm194_vm7, 1, %v417_v2 }
  0xcf   :  { %v173_v31 = vsel %vm172_vm8, 1, %v417_v2  ;;  %v197_v32 = vadd.s32 %v195_v28, %v189_v21  ;;  %vm198_vm9 = vc.u32 %v196_v24, %v192_v23 }
  0xd0   :  { %v175_v34 = vadd.s32 %v173_v31, %v167_v22  ;;  %vm176_vm10 = vc.u32 %v174_v27, %v170_v25  ;;  %v199_v35 = vsel %vm198_vm9, 1, %v417_v2 }
  0xd1   :  { %v177_v36 = vsel %vm176_vm10, 1, %v417_v2  ;;  %v201_v41 = vadd.s32 %v199_v35, %v197_v32  ;;  %v200_v2 = vadd.s32 %v196_v24, %v192_v23 }
  0xd2   :  { %v179_v45 = vadd.s32 %v177_v36, %v175_v34 }
  0xd3   :  { %v202_v47 = vadd.s32 %v201_v41, %v191_v37 }
  0xd4   :  { %v180_v39 = vadd.s32 %v179_v45, %v169_v44 }
  0xd5   :  { %v203_v49 = vadd.s32 %v202_v47, %v193_v46 }
  0xd6   :  { %v181_v50 = vadd.s32 %v180_v39, %v171_v48 }
  0xd7   :  { %v207_v51 = vadd.s32 1, %v203_v49 }
  0xd8   :  { %vm206_vm11 = vc.u32 %v181_v50, %v200_v2  ;;  %v205_v0 = vadd.s32 %v200_v2, %v181_v50 }
  0xd9   :  { %v208_v53 = vsel %vm206_vm11, %v207_v51, %v203_v49 }
  0xda   :  { %v209_v54 = vadd.s32 %v208_v53, %v204_v52 }
  0xdc   :  { %v210_v55 = vadd.s32 536870912, %v209_v54 }
  0xde   :  { %v211_v57 = vshrl.u32 %v210_v55, 30 }
  0xe0   :  { %v212_v58 = vshll.u32 %v211_v57, 30  ;;  %v235_v14 = vsub.s32 4, %v211_v57 }
  0xe2   :  { %v213_v59 = vsub.s32 %v209_v54, %v212_v58  ;;  %v236_v19 = vsel %vm113_vm14, %v235_v14, %v211_v57 }
  0xe3   :  { %v238_v22 = vsel %vm112_vm15, 0, %v236_v19 }
  0xe4   :  { %vm214_vm12 = vcmp.lt.s32.totalorder %v213_v59, 0  ;;  %v215_v60 = vsub.s32 0, %v213_v59  ;;  %v255_v28 = vadd.s32 3, %v238_v22 }
  0xe6   :  { %v216_v61 = vsel %vm214_vm12, %v215_v60, %v213_v59  ;;  %v256_v33 = vand.u32 3, %v255_v28 }
  0xe7   :  { %v217_v62 = vclz %v216_v61 }
  0xe8   :  { %vm258_vm0 = vcmp.eq.s32.totalorder %v256_v33, 0  ;;  %vm261_vm1 = vcmp.eq.s32.totalorder %v256_v33, 2  ;;  %vm257_vm2 = vcmp.lt.s32.totalorder %v256_v33, 2 }
  0xe9   :  { %v293_v63 = vadd.s32 4294967294, %v217_v62 }
  0xeb   :  { %vm294_vm13 = vcmp.lt.s32.totalorder %v293_v63, 0 }
  0xec   :  { %v220_v38 = vsel %vm294_vm13, 0, %v293_v63 }
  0xed   :  { %v221_v1 = vsub.s32 32, %v220_v38  ;;  %v225_v3 = vsub.s32 4294967266, %v220_v38  ;;  %v222_v4 = vshll.u32 %v213_v59, %v220_v38 }
  0xef   :  { %v223_v5 = vshrl.u32 %v205_v0, %v221_v1  ;;  %v226_v56 = vadd.s32 127, %v225_v3 }
  0xf1   :  { %v224_v6 = vor.u32 %v223_v5, %v222_v4  ;;  %v227_v7 = vshll.u32 %v226_v56, 23 }
  0xf3   :  { %v228_v8 = vor.u32 4788187, %v227_v7  ;;  %v231_v10 = vcvt.s32.f32 %v224_v6 }
  0xf5   :  { %v229_v9 = vand.u32 2147483647, %v228_v8 }
  0xf7   :  { %v232_v11 = vmul.f32 %v231_v10, %v229_v9 }
  0xf9   :  { %v233_v12 = vxor.u32 2147483648, %v232_v11 }
  0xfb   :  { %v234_v13 = vsel %vm113_vm14, %v233_v12, %v232_v11 }
  0xfc   :  { %v237_v15 = vsel %vm112_vm15, %v457_v26, %v234_v13 }
  0xfd   :  { %v239_v16 = vmul.f32 %v237_v15, %v237_v15 }
  0xff   :  { %v240_v17 = vmul.f32 -0.001358992, %v239_v16  ;;  %v247_v18 = vmul.f32 -0.00019511016, %v239_v16 }
 0x101   :  { %v241_v20 = vadd.f32 0.041655596, %v240_v17  ;;  %v248_v21 = vadd.f32 0.008332121, %v247_v18 }
 0x103   :  { %v242_v23 = vmul.f32 %v241_v20, %v239_v16  ;;  %v249_v24 = vmul.f32 %v248_v21, %v239_v16 }
 0x105   :  { %v243_v25 = vadd.f32 -0.4999988, %v242_v23  ;;  %v250_v27 = vadd.f32 -0.16666654, %v249_v24 }
 0x107   :  { %v244_v29 = vmul.f32 %v243_v25, %v239_v16  ;;  %v251_v31 = vmul.f32 %v250_v27, %v239_v16 }
 0x109   :  { %v245_v32 = vadd.f32 1.0, %v244_v29  ;;  %v252_v30 = vadd.f32 1.0, %v251_v31 }
 0x10b   :  { %v253_v34 = vmul.f32 %v252_v30, %v237_v15  ;;  %v262_v35 = vxor.u32 2147483648, %v245_v32 }
 0x10d   :  { %v259_v36 = vxor.u32 2147483648, %v253_v34  ;;  %v263_v41 = vsel %vm261_vm1, %v262_v35, %v253_v34 }
 0x10f   :  { %v260_v37 = vsel %vm258_vm0, %v245_v32, %v259_v36 }
 0x110   :  { %v264_v42 = vsel %vm257_vm2, %v260_v37, %v263_v41 }
 0x111   :  { %v265_v43 = vsel %vm254_vm3, nan, %v264_v42 }
 0x112   :  { %266 = vst [vmem:[#allocation9] sm:$0x3] %v265_v43 }
 0x113   :  { %284 = dma.vmem_to_hbm [thread:$0]  %s280_s2, 32, %s282_s30, [#allocation5]  }
 0x114   :  { %410 = dma.done.wait [#allocation5], 32  }
 0x115   :  { %411 = vsyncadd [#allocation5], 4294967264 }
 0x116   :  { %289 = vsyncpa [#allocation4], 1 }
 0x117   :  { %290 = vsyncpa [#allocation7], 1 }
 0x118   :  { %291 = vsyncpa [#allocation5], 1 }

</bundles_post_ra>
